<compile_context>
chip_gen: v7x
topology: tpu7x:2x2x1
jax: 0.10.0
libtpu: 0.0.40
codegen_flags: <defaults>
</compile_context>

<pallas_src>
import jax
import jax.numpy as jnp
from jax import lax
from jax.experimental import pallas as pl
from jax.experimental.pallas import tpu as pltpu


def spatial_attention_kernel(x_ref, w_ref, b_ref, o_ref):
    """x_ref/o_ref: (Bt, C, H, W) VMEM blocks; w_ref: (18,) f32 SMEM (folded
    conv*BN weights, layout [avg-channel 9 taps, max-channel 9 taps]);
    b_ref: (1,) f32 SMEM (folded BN shift)."""
    x = x_ref[...]                                   # native dtype
    bt, c, h, w = x_ref.shape

    # --- channel pooling (reduction over axis=1; accumulate in f32) ---
    inv_c = jnp.float32(1.0 / c)
    avg = jnp.sum(x.astype(jnp.float32), axis=1) * inv_c      # (Bt, H, W)
    mx = jnp.max(x, axis=1).astype(jnp.float32)               # (Bt, H, W)

    # --- 3x3 "same" conv over the two pooled maps (BN already folded in) ---
    def pad_hw(m):  # zero-pad H and W by 1 (concat-based: Mosaic-friendly)
        zr = jnp.zeros((bt, 1, w), jnp.float32)
        m = jnp.concatenate([zr, m, zr], axis=1)              # (Bt, H+2, W)
        zc = jnp.zeros((bt, h + 2, 1), jnp.float32)
        return jnp.concatenate([zc, m, zc], axis=2)           # (Bt, H+2, W+2)

    avg_p = pad_hw(avg)
    mx_p = pad_hw(mx)

    acc = jnp.zeros((bt, h, w), jnp.float32) + b_ref[0]       # folded BN shift
    for ki in range(3):
        for kj in range(3):
            a_tap = avg_p[:, ki:ki + h, kj:kj + w]
            m_tap = mx_p[:, ki:ki + h, kj:kj + w]
            acc = acc + w_ref[ki * 3 + kj] * a_tap + w_ref[9 + ki * 3 + kj] * m_tap

    scale = 1.0 / (1.0 + jnp.exp(-acc))                       # sigmoid, (Bt, H, W)

    # Final scaling in the input dtype (broadcast over the channel axis).
    o_ref[...] = x * scale[:, None, :, :].astype(x.dtype)


def _pick_bt(batch, per_image_bytes, target_bytes=2 * 1024 * 1024):
    """Images per grid step: ~target_bytes of x per step, keep >= 2 grid steps
    when possible (v7x has 2 TensorCores), and require bt | batch."""
    bt = int(max(1, min(batch, target_bytes // max(per_image_bytes, 1))))
    if batch >= 2:
        bt = min(bt, batch // 2)
    while batch % bt:
        bt -= 1
    return bt


def _block_spec(shape, index_map, buffers=None):
    if buffers is not None:
        try:
            return pl.BlockSpec(shape, index_map, pipeline_mode=pl.Buffered(buffers))
        except (AttributeError, TypeError):   # older jax without pipeline_mode
            pass
    return pl.BlockSpec(shape, index_map)


def spatial_attention(x, conv_w, gamma, beta, running_mean, running_var, eps=1e-5):
    """x: (B, C, H, W); conv_w: (1, 2, 3, 3); BN params: shape (1,).  Returns (B, C, H, W)."""
    B, C, H, W = x.shape

    # Fold eval-mode BatchNorm2d(1) into the conv:  bn(conv(m)) = s*conv(m) + t.
    s = gamma.reshape(()) / jnp.sqrt(running_var.reshape(()) + eps)
    t = beta.reshape(()) - running_mean.reshape(()) * s
    w_flat = (conv_w.reshape(2, 3, 3).astype(jnp.float32) * s).reshape(-1)   # (18,)
    b_flat = t.reshape(1).astype(jnp.float32)                                # (1,)

    bt = _pick_bt(B, C * H * W * x.dtype.itemsize)
    steps = B // bt
    bufs = 3 if steps >= 3 else None      # deeper pipelining only on long grids

    grid_spec = pltpu.PrefetchScalarGridSpec(
        num_scalar_prefetch=0,
        grid=(steps,),
        in_specs=[
            _block_spec((bt, C, H, W), lambda i: (i, 0, 0, 0), bufs),   # x
            pl.BlockSpec(memory_space=pltpu.MemorySpace.SMEM),          # folded conv*BN weights
            pl.BlockSpec(memory_space=pltpu.MemorySpace.SMEM),          # folded BN shift
        ],
        out_specs=_block_spec((bt, C, H, W), lambda i: (i, 0, 0, 0), bufs),
    )

    return pl.pallas_call(
        spatial_attention_kernel,
        out_shape=jax.ShapeDtypeStruct((B, C, H, W), x.dtype),
        grid_spec=grid_spec,
        compiler_params=pltpu.CompilerParams(
            dimension_semantics=("parallel",),
            vmem_limit_bytes=64 * 1024 * 1024,
        ),
    )(x, w_flat, b_flat)


def reference(x, conv_w, gamma, beta, running_mean, running_var, eps=1e-5):
    """Pure-JAX reference of the PyTorch forward (zero-offset deform_conv2d + eval BN)."""
    avg = jnp.mean(x, axis=1, keepdims=True)
    mx = jnp.max(x, axis=1, keepdims=True)
    m = jnp.concatenate([avg, mx], axis=1)                     # (B, 2, H, W)
    out = lax.conv_general_dilated(
        m, conv_w.astype(jnp.float32),
        window_strides=(1, 1), padding=((1, 1), (1, 1)),
        dimension_numbers=("NCHW", "OIHW", "NCHW"))            # (B, 1, H, W)
    g = gamma.reshape(1, 1, 1, 1)
    b = beta.reshape(1, 1, 1, 1)
    rm = running_mean.reshape(1, 1, 1, 1)
    rv = running_var.reshape(1, 1, 1, 1)
    out = g * (out - rm) / jnp.sqrt(rv + eps) + b
    return x * jax.nn.sigmoid(out)


if __name__ == "__main__":
    B, C, H, W = 2, 4, 16, 16

    key = jax.random.PRNGKey(0)
    kx, kw, kg, kb, km, kv = jax.random.split(key, 6)

    x = jax.random.normal(kx, (B, C, H, W), dtype=jnp.float32)

    # PyTorch Conv2d(2, 1, 3) init: U(-1/sqrt(fan_in), 1/sqrt(fan_in)), fan_in = 2*3*3.
    bound = 1.0 / (2 * 3 * 3) ** 0.5
    conv_w = jax.random.uniform(kw, (1, 2, 3, 3), jnp.float32, -bound, bound)

    # BatchNorm2d(1) eval-mode parameters / running statistics (non-trivial values).
    gamma = 1.0 + 0.1 * jax.random.normal(kg, (1,), jnp.float32)
    beta = 0.1 * jax.random.normal(kb, (1,), jnp.float32)
    running_mean = 0.1 * jax.random.normal(km, (1,), jnp.float32)
    running_var = 1.0 + 0.1 * jax.random.uniform(kv, (1,), jnp.float32)

    y = spatial_attention(x, conv_w, gamma, beta, running_mean, running_var)
    y = jax.block_until_ready(y)

    y_ref = reference(x, conv_w, gamma, beta, running_mean, running_var)
    err = float(jnp.max(jnp.abs(y - y_ref)))
    assert jnp.allclose(y, y_ref, atol=1e-5, rtol=1e-5), f"mismatch vs reference, max abs err={err}"

    print("KERNEL_OK")
</pallas_src>

<mosaic_0001>
module attributes {stable_mosaic.version = 11 : i64} {
  func.func @spatial_attention_kernel(%arg0: i32, %arg1: memref<1x4x16x16xf32, #tpu.memory_space<vmem>>, %arg2: memref<18xf32, #tpu.memory_space<smem>>, %arg3: memref<1xf32, #tpu.memory_space<smem>>, %arg4: memref<1x4x16x16xf32, #tpu.memory_space<vmem>>) attributes {dimension_semantics = [#tpu.dimension_semantics<parallel>], iteration_bounds = array<i64: 2>, scalar_prefetch = 0 : i64, scratch_operands = 0 : i64, tpu.core_type = #tpu.core_type<tc>, window_params = [{transform_indices = @transform_0, window_bounds = array<i64: 1, 4, 16, 16>}, {transform_indices = @transform_1, window_bounds = array<i64: 18>}, {transform_indices = @transform_2, window_bounds = array<i64: 1>}, {transform_indices = @transform_3, window_bounds = array<i64: 1, 4, 16, 16>}]} {
    %c0 = arith.constant 0 : index
    %c0_0 = arith.constant 0 : index
    %c0_1 = arith.constant 0 : index
    %c0_2 = arith.constant 0 : index
    %0 = vector.load %arg1[%c0, %c0_0, %c0_1, %c0_2] : memref<1x4x16x16xf32, #tpu.memory_space<vmem>>, vector<1x4x16x16xf32>
    %cst = arith.constant dense<0.000000e+00> : vector<1x16x16xf32>
    %1 = vector.multi_reduction <add>, %0, %cst [1] : vector<1x4x16x16xf32> to vector<1x16x16xf32>
    %cst_3 = arith.constant 2.500000e-01 : f32
    %2 = vector.broadcast %cst_3 : f32 to vector<1x16x16xf32>
    %3 = arith.mulf %1, %2 : vector<1x16x16xf32>
    %cst_4 = arith.constant dense<0xFF800000> : vector<1x16x16xf32>
    %4 = vector.multi_reduction <maximumf>, %0, %cst_4 [1] : vector<1x4x16x16xf32> to vector<1x16x16xf32>
    %cst_5 = arith.constant 0.000000e+00 : f32
    %5 = vector.broadcast %cst_5 : f32 to vector<1x1x16xf32>
    %6 = tpu.concatenate %5, %3, %5 in 1 : vector<1x1x16xf32>, vector<1x16x16xf32>, vector<1x1x16xf32> -> vector<1x18x16xf32>
    %cst_6 = arith.constant 0.000000e+00 : f32
    %7 = vector.broadcast %cst_6 : f32 to vector<1x18x1xf32>
    %8 = tpu.concatenate %7, %6, %7 in 2 : vector<1x18x1xf32>, vector<1x18x16xf32>, vector<1x18x1xf32> -> vector<1x18x18xf32>
    %cst_7 = arith.constant 0.000000e+00 : f32
    %9 = vector.broadcast %cst_7 : f32 to vector<1x1x16xf32>
    %10 = tpu.concatenate %9, %4, %9 in 1 : vector<1x1x16xf32>, vector<1x16x16xf32>, vector<1x1x16xf32> -> vector<1x18x16xf32>
    %cst_8 = arith.constant 0.000000e+00 : f32
    %11 = vector.broadcast %cst_8 : f32 to vector<1x18x1xf32>
    %12 = tpu.concatenate %11, %10, %11 in 2 : vector<1x18x1xf32>, vector<1x18x16xf32>, vector<1x18x1xf32> -> vector<1x18x18xf32>
    %cst_9 = arith.constant 0.000000e+00 : f32
    %13 = vector.broadcast %cst_9 : f32 to vector<1x16x16xf32>
    %c0_10 = arith.constant 0 : index
    %14 = memref.load %arg3[%c0_10] : memref<1xf32, #tpu.memory_space<smem>>
    %15 = vector.broadcast %14 : f32 to vector<1x16x16xf32>
    %16 = arith.addf %13, %15 : vector<1x16x16xf32>
    %17 = vector.extract_strided_slice %8 {offsets = [0, 0, 0], sizes = [1, 16, 16], strides = [1, 1, 1]} : vector<1x18x18xf32> to vector<1x16x16xf32>
    %18 = vector.extract_strided_slice %12 {offsets = [0, 0, 0], sizes = [1, 16, 16], strides = [1, 1, 1]} : vector<1x18x18xf32> to vector<1x16x16xf32>
    %c0_11 = arith.constant 0 : index
    %19 = memref.load %arg2[%c0_11] : memref<18xf32, #tpu.memory_space<smem>>
    %20 = vector.broadcast %19 : f32 to vector<1x16x16xf32>
    %21 = arith.mulf %20, %17 : vector<1x16x16xf32>
    %22 = arith.addf %16, %21 : vector<1x16x16xf32>
    %c9 = arith.constant 9 : index
    %23 = memref.load %arg2[%c9] : memref<18xf32, #tpu.memory_space<smem>>
    %24 = vector.broadcast %23 : f32 to vector<1x16x16xf32>
    %25 = arith.mulf %24, %18 : vector<1x16x16xf32>
    %26 = arith.addf %22, %25 : vector<1x16x16xf32>
    %27 = vector.extract_strided_slice %8 {offsets = [0, 0, 1], sizes = [1, 16, 16], strides = [1, 1, 1]} : vector<1x18x18xf32> to vector<1x16x16xf32>
    %28 = vector.extract_strided_slice %12 {offsets = [0, 0, 1], sizes = [1, 16, 16], strides = [1, 1, 1]} : vector<1x18x18xf32> to vector<1x16x16xf32>
    %c1 = arith.constant 1 : index
    %29 = memref.load %arg2[%c1] : memref<18xf32, #tpu.memory_space<smem>>
    %30 = vector.broadcast %29 : f32 to vector<1x16x16xf32>
    %31 = arith.mulf %30, %27 : vector<1x16x16xf32>
    %32 = arith.addf %26, %31 : vector<1x16x16xf32>
    %c10 = arith.constant 10 : index
    %33 = memref.load %arg2[%c10] : memref<18xf32, #tpu.memory_space<smem>>
    %34 = vector.broadcast %33 : f32 to vector<1x16x16xf32>
    %35 = arith.mulf %34, %28 : vector<1x16x16xf32>
    %36 = arith.addf %32, %35 : vector<1x16x16xf32>
    %37 = vector.extract_strided_slice %8 {offsets = [0, 0, 2], sizes = [1, 16, 16], strides = [1, 1, 1]} : vector<1x18x18xf32> to vector<1x16x16xf32>
    %38 = vector.extract_strided_slice %12 {offsets = [0, 0, 2], sizes = [1, 16, 16], strides = [1, 1, 1]} : vector<1x18x18xf32> to vector<1x16x16xf32>
    %c2 = arith.constant 2 : index
    %39 = memref.load %arg2[%c2] : memref<18xf32, #tpu.memory_space<smem>>
    %40 = vector.broadcast %39 : f32 to vector<1x16x16xf32>
    %41 = arith.mulf %40, %37 : vector<1x16x16xf32>
    %42 = arith.addf %36, %41 : vector<1x16x16xf32>
    %c11 = arith.constant 11 : index
    %43 = memref.load %arg2[%c11] : memref<18xf32, #tpu.memory_space<smem>>
    %44 = vector.broadcast %43 : f32 to vector<1x16x16xf32>
    %45 = arith.mulf %44, %38 : vector<1x16x16xf32>
    %46 = arith.addf %42, %45 : vector<1x16x16xf32>
    %47 = vector.extract_strided_slice %8 {offsets = [0, 1, 0], sizes = [1, 16, 16], strides = [1, 1, 1]} : vector<1x18x18xf32> to vector<1x16x16xf32>
    %48 = vector.extract_strided_slice %12 {offsets = [0, 1, 0], sizes = [1, 16, 16], strides = [1, 1, 1]} : vector<1x18x18xf32> to vector<1x16x16xf32>
    %c3 = arith.constant 3 : index
    %49 = memref.load %arg2[%c3] : memref<18xf32, #tpu.memory_space<smem>>
    %50 = vector.broadcast %49 : f32 to vector<1x16x16xf32>
    %51 = arith.mulf %50, %47 : vector<1x16x16xf32>
    %52 = arith.addf %46, %51 : vector<1x16x16xf32>
    %c12 = arith.constant 12 : index
    %53 = memref.load %arg2[%c12] : memref<18xf32, #tpu.memory_space<smem>>
    %54 = vector.broadcast %53 : f32 to vector<1x16x16xf32>
    %55 = arith.mulf %54, %48 : vector<1x16x16xf32>
    %56 = arith.addf %52, %55 : vector<1x16x16xf32>
    %57 = vector.extract_strided_slice %8 {offsets = [0, 1, 1], sizes = [1, 16, 16], strides = [1, 1, 1]} : vector<1x18x18xf32> to vector<1x16x16xf32>
    %58 = vector.extract_strided_slice %12 {offsets = [0, 1, 1], sizes = [1, 16, 16], strides = [1, 1, 1]} : vector<1x18x18xf32> to vector<1x16x16xf32>
    %c4 = arith.constant 4 : index
    %59 = memref.load %arg2[%c4] : memref<18xf32, #tpu.memory_space<smem>>
    %60 = vector.broadcast %59 : f32 to vector<1x16x16xf32>
    %61 = arith.mulf %60, %57 : vector<1x16x16xf32>
    %62 = arith.addf %56, %61 : vector<1x16x16xf32>
    %c13 = arith.constant 13 : index
    %63 = memref.load %arg2[%c13] : memref<18xf32, #tpu.memory_space<smem>>
    %64 = vector.broadcast %63 : f32 to vector<1x16x16xf32>
    %65 = arith.mulf %64, %58 : vector<1x16x16xf32>
    %66 = arith.addf %62, %65 : vector<1x16x16xf32>
    %67 = vector.extract_strided_slice %8 {offsets = [0, 1, 2], sizes = [1, 16, 16], strides = [1, 1, 1]} : vector<1x18x18xf32> to vector<1x16x16xf32>
    %68 = vector.extract_strided_slice %12 {offsets = [0, 1, 2], sizes = [1, 16, 16], strides = [1, 1, 1]} : vector<1x18x18xf32> to vector<1x16x16xf32>
    %c5 = arith.constant 5 : index
    %69 = memref.load %arg2[%c5] : memref<18xf32, #tpu.memory_space<smem>>
    %70 = vector.broadcast %69 : f32 to vector<1x16x16xf32>
    %71 = arith.mulf %70, %67 : vector<1x16x16xf32>
    %72 = arith.addf %66, %71 : vector<1x16x16xf32>
    %c14 = arith.constant 14 : index
    %73 = memref.load %arg2[%c14] : memref<18xf32, #tpu.memory_space<smem>>
    %74 = vector.broadcast %73 : f32 to vector<1x16x16xf32>
    %75 = arith.mulf %74, %68 : vector<1x16x16xf32>
    %76 = arith.addf %72, %75 : vector<1x16x16xf32>
    %77 = vector.extract_strided_slice %8 {offsets = [0, 2, 0], sizes = [1, 16, 16], strides = [1, 1, 1]} : vector<1x18x18xf32> to vector<1x16x16xf32>
    %78 = vector.extract_strided_slice %12 {offsets = [0, 2, 0], sizes = [1, 16, 16], strides = [1, 1, 1]} : vector<1x18x18xf32> to vector<1x16x16xf32>
    %c6 = arith.constant 6 : index
    %79 = memref.load %arg2[%c6] : memref<18xf32, #tpu.memory_space<smem>>
    %80 = vector.broadcast %79 : f32 to vector<1x16x16xf32>
    %81 = arith.mulf %80, %77 : vector<1x16x16xf32>
    %82 = arith.addf %76, %81 : vector<1x16x16xf32>
    %c15 = arith.constant 15 : index
    %83 = memref.load %arg2[%c15] : memref<18xf32, #tpu.memory_space<smem>>
    %84 = vector.broadcast %83 : f32 to vector<1x16x16xf32>
    %85 = arith.mulf %84, %78 : vector<1x16x16xf32>
    %86 = arith.addf %82, %85 : vector<1x16x16xf32>
    %87 = vector.extract_strided_slice %8 {offsets = [0, 2, 1], sizes = [1, 16, 16], strides = [1, 1, 1]} : vector<1x18x18xf32> to vector<1x16x16xf32>
    %88 = vector.extract_strided_slice %12 {offsets = [0, 2, 1], sizes = [1, 16, 16], strides = [1, 1, 1]} : vector<1x18x18xf32> to vector<1x16x16xf32>
    %c7 = arith.constant 7 : index
    %89 = memref.load %arg2[%c7] : memref<18xf32, #tpu.memory_space<smem>>
    %90 = vector.broadcast %89 : f32 to vector<1x16x16xf32>
    %91 = arith.mulf %90, %87 : vector<1x16x16xf32>
    %92 = arith.addf %86, %91 : vector<1x16x16xf32>
    %c16 = arith.constant 16 : index
    %93 = memref.load %arg2[%c16] : memref<18xf32, #tpu.memory_space<smem>>
    %94 = vector.broadcast %93 : f32 to vector<1x16x16xf32>
    %95 = arith.mulf %94, %88 : vector<1x16x16xf32>
    %96 = arith.addf %92, %95 : vector<1x16x16xf32>
    %97 = vector.extract_strided_slice %8 {offsets = [0, 2, 2], sizes = [1, 16, 16], strides = [1, 1, 1]} : vector<1x18x18xf32> to vector<1x16x16xf32>
    %98 = vector.extract_strided_slice %12 {offsets = [0, 2, 2], sizes = [1, 16, 16], strides = [1, 1, 1]} : vector<1x18x18xf32> to vector<1x16x16xf32>
    %c8 = arith.constant 8 : index
    %99 = memref.load %arg2[%c8] : memref<18xf32, #tpu.memory_space<smem>>
    %100 = vector.broadcast %99 : f32 to vector<1x16x16xf32>
    %101 = arith.mulf %100, %97 : vector<1x16x16xf32>
    %102 = arith.addf %96, %101 : vector<1x16x16xf32>
    %c17 = arith.constant 17 : index
    %103 = memref.load %arg2[%c17] : memref<18xf32, #tpu.memory_space<smem>>
    %104 = vector.broadcast %103 : f32 to vector<1x16x16xf32>
    %105 = arith.mulf %104, %98 : vector<1x16x16xf32>
    %106 = arith.addf %102, %105 : vector<1x16x16xf32>
    %cst_12 = arith.constant 0.000000e+00 : f32
    %107 = vector.broadcast %cst_12 : f32 to vector<1x16x16xf32>
    %108 = arith.subf %107, %106 : vector<1x16x16xf32>
    %109 = math.exp %108 : vector<1x16x16xf32>
    %cst_13 = arith.constant 1.000000e+00 : f32
    %110 = vector.broadcast %cst_13 : f32 to vector<1x16x16xf32>
    %111 = arith.addf %110, %109 : vector<1x16x16xf32>
    %cst_14 = arith.constant 1.000000e+00 : f32
    %112 = vector.broadcast %cst_14 : f32 to vector<1x16x16xf32>
    %113 = arith.divf %112, %111 : vector<1x16x16xf32>
    %114 = vector.shape_cast %113 : vector<1x16x16xf32> to vector<1x1x16x16xf32>
    %115 = vector.broadcast %114 : vector<1x1x16x16xf32> to vector<1x4x16x16xf32>
    %116 = arith.mulf %0, %115 : vector<1x4x16x16xf32>
    %c0_15 = arith.constant 0 : index
    %c0_16 = arith.constant 0 : index
    %c0_17 = arith.constant 0 : index
    %c0_18 = arith.constant 0 : index
    %117 = vector.load %arg4[%c0_15, %c0_16, %c0_17, %c0_18] : memref<1x4x16x16xf32, #tpu.memory_space<vmem>>, vector<1x4x16x16xf32>
    tpu.vector_store %arg4[%c0_15, %c0_16, %c0_17, %c0_18], %116 {strides = array<i32>} : memref<1x4x16x16xf32, #tpu.memory_space<vmem>>, vector<1x4x16x16xf32>,
    return
  }
  func.func @transform_0(%arg0: i32) -> (i32, i32, i32, i32) {
    %c0_i32 = arith.constant 0 : i32
    %c0_i32_0 = arith.constant 0 : i32
    %c0_i32_1 = arith.constant 0 : i32
    %c0_i32_2 = arith.constant 0 : i32
    return %arg0, %c0_i32, %c0_i32_0, %c0_i32_1 : i32, i32, i32, i32
  }
  func.func @transform_1(%arg0: i32) -> i32 {
    %c0_i32 = arith.constant 0 : i32
    %c0_i32_0 = arith.constant 0 : i32
    return %c0_i32 : i32
  }
  func.func @transform_2(%arg0: i32) -> i32 {
    %c0_i32 = arith.constant 0 : i32
    %c0_i32_0 = arith.constant 0 : i32
    return %c0_i32 : i32
  }
  func.func @transform_3(%arg0: i32) -> (i32, i32, i32, i32) {
    %c0_i32 = arith.constant 0 : i32
    %c0_i32_0 = arith.constant 0 : i32
    %c0_i32_1 = arith.constant 0 : i32
    %c0_i32_2 = arith.constant 0 : i32
    return %arg0, %c0_i32, %c0_i32_0, %c0_i32_1 : i32, i32, i32, i32
  }
}

</mosaic_0001>

<bundles_post_ra>
// kernel: tpu_custom_call.1
= control target key start
LH: loop header
LB: loop body
LE: loop exit
PB: predicated region body
PF: predicated region fallthrough
CT: control target
= control target key end

     0   :  { %s1506_s0 = inlined_call_operand.hbm [shape: f32[2,4,16,16], index: 0, kind: input, shape index: {}]   ;;  %s1507_s1 = inlined_call_operand.hbm [shape: f32[18], index: 1, kind: input, shape index: {}]   ;;  %s1508_s2 = inlined_call_operand.<no memory space> [shape: f32[1], index: 2, kind: input, shape index: {}]   ;;  %s1509_s3 = inlined_call_operand.hbm [shape: f32[2,4,16,16], index: 3, kind: output, shape index: {}]  }
   0x1   :  { %8 = sst [smem:[#allocation2]] %s1508_s2 }
   0x2   :  { %9 = vsyncpa [#allocation4], 0 }
   0x3   :  { %11 = vsyncpa [#allocation4 + $0x1], 0 }
   0x4   :  { %12 = vsyncpa [#allocation6], 0 }
   0x5   :  { %13 = vsyncpa [#allocation5], 0 }
   0x6   :  { %15 = vsyncpa [#allocation5 + $0x1], 0  ;;  %s987_s14 = smov 0   ;;  %s989_s15 = smov 0  }
   0x7   :  { %s991_s16 = smov 0   ;;  %s993_s17 = smov 0  }
   0x8 LB: > { %s1008_s2 = sadd.s32 4294967295, %s952_s17   ;;  %s732_s18 = sadd.s32 4294967294, %s952_s17   ;;  %s952_s17 = sphi %s993_s17, %s1529_s17   ;;  %s948_s16 = sphi %s991_s16, %s1528_s16   ;;  %s944_s15 = sphi %s989_s15, %s1527_s15   ;;  %s940_s14 = sphi %s987_s14, %s1526_s14  }
   0x9   : > { %s1012_s19 = sadd.s32 1, %s952_s17   ;;  %s28_s20 = sadd.s32 1, %s948_s16 }
   0xa   : > { %s25_s21 = ssub.s32 %s952_s17, %s1012_s19  ;;  %p35_p0 = scmp.ne.s32.totalorder %s948_s16, %s944_s15 }
   0xb   : > { %p26_p1 = scmp.eq.s32.totalorder %s25_s21, 0  ;;  %p36_p2 = scmp.eq.s32.totalorder %s952_s17, 0 }
   0xc   : > { %p41_p3 = scmp.ne.s32.totalorder %s944_s15, %s940_s14  ;;  %p1510_p4 = scmp.eq.s32.totalorder %s1008_s2, 0 }
   0xd   : > { %s1024_s22 = scalar_select %p26_p1, %s948_s16, %s28_s20  }
   0xe   : > { %p1026_p5 = por %p36_p2, %p35_p0  ;;  %p1032_p6 = por %p1510_p4, %p41_p3 }
   0xf   : > { %p107_p7 = scmp.eq.s32.totalorder %s1008_s2, 1  ;;  %p113_p8 = scmp.eq.s32.totalorder %s732_s18, 1 }
  0x10   : > { %s1514_s24 = scalar_select %p1032_p6, 1, 0 }
  0x11   : > { %p733_p9 = scmp.ge.s32.totalorder %s952_s17, 1  ;;  %p120_p10 = scmp.lt.s32.totalorder %s952_s17, 3 }
  0x12   : > { %p1039_p11 = por %p107_p7, %p35_p0  ;;  %p1043_p12 = por %p113_p8, %p41_p3 }
  0x13   : > { %p1047_p13 = pnand %p733_p9, %p120_p10  ;;  %p788_p4 = scmp.lt.s32.totalorder %s952_s17, 2 }
  0x14   : > { %s1515_s25 = scalar_select %p1039_p11, 1, 0 }
  0x15   : > { %s1516_s26 = scalar_select %p1043_p12, 1, 0 }
  0x16   : > { %p775_p2 = pneg %p1047_p13  ;;  %s145_s28 = sand.u32 1, %s948_s16  }
  0x17   : > { %s765_s29 = sshll.u32 %s952_s17, 10  ;;  %p1518_p6 = scmp.eq.s32.totalorder %s1008_s2, 0 }
  0x18   : > { %p1061_p7 = pnand %p788_p4, %p1026_p5  ;;  %s736_s4 = sshll.u32 %s145_s28, 6 }
  0x19   : > { %p776_p0 = pnand %p775_p2, %p1518_p6  ;;  %s839_s7 = scalar_lea.hbm %s1507_s1, 16 }
  0x1a   : > { %p840_p3 = scmp.ne.s32.totalorder %s1507_s1, %s839_s7  ;;  %p846_p6 = scmp.lt.u32.totalorder %s839_s7, %s1507_s1 }
  0x1b   : > { %p841_p8 = pneg %p776_p0 }
  0x1d   : > { %p842_p9 = pnand %p841_p8, %p840_p3 }
  0x1f   : > { %p843_p10 = pneg %p842_p9 }
  0x21   : > { %p848_p4 = pnand %p846_p6, %p843_p10 }
  0x23   : > { %851 = shalt.err (!%p848_p4)
}
  0x24   : > { %s954_s12 = smov [#allocation7]   ;;  %s1080_s23 = scalar_lea.hbm %s1506_s0, %s765_s29 }
  0x25   : > { %778 = dma.hbm_to_smem (!%p776_p0), %s1507_s1, 16, %s954_s12, [#allocation6]  }
  0x26   : > { %s149_s5 = scalar_lea.vmem [#allocation3], %s736_s4  ;;  %s1084_s7 = scalar_lea.sflag [#allocation4], %s145_s28 }
  0x27   : > { %s156_s6 = sshll.u32 %s149_s5, 4  ;;  %s852_s8 = scalar_lea.hbm %s1080_s23, 1024  ;;  %s1082_s6 = int_to_ptr.vmem [resolvable:$true] %s156_s6 }
  0x28   : > { %p853_p5 = scmp.ne.s32.totalorder %s1080_s23, %s852_s8  ;;  %p854_p2 = pneg %p1061_p7 }
  0x29   : > { %s857_s10 = scalar_lea.hbm %s1506_s0, 2048  ;;  %p858_p8 = scmp.lt.u32.totalorder %s1080_s23, %s1506_s0 }
  0x2a   : > { %p855_p0 = pnand %p854_p2, %p853_p5  ;;  %p859_p9 = scmp.lt.u32.totalorder %s857_s10, %s852_s8 }
  0x2b   : > { %p861_p6 = scmp.lt.u32.totalorder %s852_s8, %s1080_s23 }
  0x2c   : > { %p856_p3 = pneg %p855_p0  ;;  %p860_p10 = por %p859_p9, %p858_p8 }
  0x2e   : > { %p862_p4 = por %p861_p6, %p860_p10 }
  0x30   : > { %p863_p1 = pnand %p862_p4, %p856_p3 }
  0x32   : > { %866 = shalt.err (!%p863_p1)
}
  0x33   : > { %s867_s28 = scalar_lea.vmem %s1082_s6, 1024  ;;  %s955_s4 = smov [#allocation3]  }
  0x34   : > { %p868_p5 = scmp.ne.s32.totalorder %s1082_s6, %s867_s28  ;;  %s872_s13 = sshll.u32 %s955_s4, 4  ;;  %s873_s13 = int_to_ptr.vmem [resolvable:$false] %s872_s13 }
  0x35   : > { %s874_s18 = scalar_lea.vmem %s873_s13, 2048  ;;  %p875_p11 = scmp.lt.s32.totalorder %s1082_s6, %s873_s13 }
  0x36   : > { %p870_p0 = pnand %p868_p5, %p854_p2  ;;  %p876_p8 = scmp.lt.s32.totalorder %s874_s18, %s867_s28 }
  0x38   : > { %p871_p12 = pneg %p870_p0  ;;  %p877_p9 = por %p876_p8, %p875_p11 }
  0x3a   : > { %p878_p10 = pnand %p877_p9, %p871_p12 }
  0x3c   : > { %881 = shalt.err (!%p878_p10)
}
  0x3d   : > { %s956_s20 = smov 128   ;;  %s957_s21 = smov 8  }
  0x3e   : > { %782 = dma.hbm_to_vmem [thread:$0]  (!%p1061_p7), %s1080_s23, 1024, %s1082_s6, %s1084_s7, %s956_s20, %s956_s20, %s957_s21  }
  0x3f   : > { %168 = sbr.rel (%p1047_p13) target bundleno = 417 (0x1a1), region = 32  ;;  %s1115_s5 = sand.u32 (!%p1047_p13), 1, %s944_s15  }
  0x40   : > { %s740_s8 = sshll.u32 (!%p1047_p13), %s1115_s5, 6  ;;  %s171_s29 = scalar_lea.sflag (!%p1047_p13), [#allocation4], %s1115_s5 }
  0x41   : > { %s174_s9 = scalar_lea.vmem (!%p1047_p13), [#allocation3], %s740_s8  ;;  %p1520_p11 = scmp.ne.s32.totalorder (!%p1047_p13), %s1514_s24, 0 }
  0x46   : > { %927 = dma.done.wait (%p1520_p11), %s171_s29, 1024  }
  0x47   : > { %929 = vsyncadd (%p1520_p11), %s171_s29, 4294966272  ;;  %p1521_p12 = scmp.eq.s32.totalorder %s1008_s2, 0 }
  0x49   : > { %931 = dma.done.wait (%p1521_p12), [#allocation6], 16   ;;  %p1522_p13 = pmov %p1521_p12 }
  0x4b   : > { %933 = vsyncadd (%p1522_p13), [#allocation6], 4294967280 }
  0x4c   : > { %183 = sfence }
  0x4d   : > { %v1129_v0 = vld [vmem:[%s174_s9] sm:$0xff]  ;;  %v1131_v1 = vld [vmem:[%s174_s9 + $0x10] sm:$0xff]  ;;  %vm210_vm0 = vcmask 130048   ;;  %v1143_v7 = vld [vmem:[%s174_s9 + $0x8] sm:$0xff]  ;;  %vm243_vm1 = vcmask 1040384   ;;  %s958_s24 = smov 1  }
  0x4e   : > { %v1133_v2 = vld [vmem:[%s174_s9 + $0x20] sm:$0xff]  ;;  %v1135_v3 = vld [vmem:[%s174_s9 + $0x30] sm:$0xff]  ;;  %v227_v4 = vsel %vm210_vm0, %v1129_v0, -inf  ;;  %v228_v5 = vsel %vm210_vm0, %v1131_v1, -inf  ;;  %v1145_v8 = vld [vmem:[%s174_s9 + $0x18] sm:$0xff]  ;;  %v234_v13 = vsel %vm210_vm0, %v1143_v7, -inf }
  0x4f   : > { %v229_v6 = vsel %vm210_vm0, %v1133_v2, -inf  ;;  %v231_v10 = vsel %vm210_vm0, %v1135_v3, -inf  ;;  %v1149_v11 = vld [vmem:[%s174_s9 + $0x28] sm:$0xff]  ;;  %v1151_v12 = vld [vmem:[%s174_s9 + $0x38] sm:$0xff]  ;;  %v235_v14 = vsel %vm210_vm0, %v1145_v8, -inf  ;;  %v211_v18 = vsel %vm210_vm0, %v1129_v0, 0.0 }
  0x50   : > { %v230_v9 = vmax.f32 %v227_v4, %v229_v6  ;;  %v232_v15 = vmax.f32 %v228_v5, %v231_v10  ;;  %v236_v16 = vsel %vm210_vm0, %v1149_v11, -inf  ;;  %v238_v17 = vsel %vm210_vm0, %v1151_v12, -inf  ;;  %s1183_s27 = sld [smem:[#allocation7 + $0xa]]  ;;  %s751_s30 = sld [smem:[#allocation7 + $0xd]] }
  0x51   : > { %v237_v19 = vmax.f32 %v234_v13, %v236_v16  ;;  %v239_v20 = vmax.f32 %v235_v14, %v238_v17  ;;  %v212_v21 = vsel %vm210_vm0, %v1131_v1, 0.0  ;;  %v214_v22 = vsel %vm210_vm0, %v1133_v2, 0.0  ;;  %s1185_s23 = sld [smem:[#allocation7 + $0xb]]  ;;  %s1187_s6 = sld [smem:[#allocation7 + $0xe]] }
  0x52   : > { %v233_v23 = vmax.f32 %v230_v9, %v232_v15  ;;  %v213_v24 = vadd.f32 %v212_v21, %v211_v18  ;;  %v218_v25 = vsel %vm210_vm0, %v1143_v7, 0.0  ;;  %v216_v27 = vsel %vm210_vm0, %v1135_v3, 0.0  ;;  %s1189_s7 = sld [smem:[#allocation7 + $0x10]]  ;;  %s1192_s10 = sld [smem:[#allocation7 + $0x1]] }
  0x53   : > { %v240_v26 = vmax.f32 %v237_v19, %v239_v20  ;;  %v219_v28 = vsel %vm210_vm0, %v1145_v8, 0.0  ;;  %v221_v29 = vsel %vm210_vm0, %v1149_v11, 0.0  ;;  %v223_v34 = vsel %vm210_vm0, %v1151_v12, 0.0  ;;  %s1194_s11 = sld [smem:[#allocation7 + $0x2]]  ;;  %s1197_s12 = sld [smem:[#allocation7 + $0x4]] }
  0x54   : > { %v272_v30 = vrot.slane %v233_v23, 7  ;;  %v215_v31 = vadd.f32 %v214_v22, %v213_v24  ;;  %v220_v32 = vadd.f32 %v219_v28, %v218_v25  ;;  %vm262_vm2 = vcmask 7168   ;;  %s1202_s28 = sld [smem:[#allocation7 + $0x5]]  ;;  %s1204_s4 = sld [smem:[#allocation7 + $0x7]] }
  0x55   : > { %v273_v33 = vrot.slane %v240_v26, 7  ;;  %vm266_vm3 = vcmask 138240   ;;  %s1207_s13 = sld [smem:[#allocation2]]  ;;  %s959_s21 = smov 127   ;;  %vm375_vm4 = vcmask 1046528   ;;  %vm494_vm5 = vcmask 1045504  }
  0x56   : > { %v277_v35 = vsel %vm243_vm1, 0.0, %v272_v30  ;;  %v217_v36 = vadd.f32 %v216_v27, %v215_v31  ;;  %v222_v37 = vadd.f32 %v221_v29, %v220_v32  ;;  %v326_v49 = vstv %s1183_s27  ;;  %s1210_s18 = sld [smem:[#allocation7 + $0x8]]  ;;  %s1217_s29 = sld [smem:[#allocation7 + $0x9]] }
  0x57   : > { %281 = vrot.lane.b32.xlu1 %v277_v35, %s958_s24  ;;  %v274_v38 = vsel %vm243_vm1, %v272_v30, %v273_v33  ;;  %v278_v44 = vsel %vm243_vm1, %v273_v33, 0.0  ;;  %v424_v52 = vstv %s751_s30  ;;  %v354_v55 = vstv %s1185_s23  ;;  %s1212_s20 = sld [smem:[#allocation7]]  ;;  %s1222_s9 = sld [smem:[#allocation7 + $0xc]] }
  0x58   : > { %v225_v39 = vmul.f32 0.25, %v217_v36  ;;  %v224_v40 = vadd.f32 %v223_v34, %v222_v37  ;;  %v312_v4 = vstv %s1192_s10  ;;  %v466_v6 = vstv %s1187_s6  ;;  %s1235_s27 = sld [smem:[#allocation7 + $0xf]]  ;;  %s960_s30 = smov 126  }
  0x59   : > { %v340_v5 = vstv %s1194_s11  ;;  %v1231_v9 = vstv %s1189_s7  ;;  %v403_v18 = vstv %s1197_s12  ;;  %s1249_s23 = sld [smem:[#allocation7 + $0x6]]  ;;  %s759_s6 = sld [smem:[#allocation7 + $0x11]] }
  0x5a   : > { %v244_v41 = vrot.slane %v225_v39, 7  ;;  %v226_v42 = vmul.f32 0.25, %v224_v40  ;;  %v445_v19 = vstv %s1202_s28  ;;  %v1247_v20 = vstv %s1204_s4  ;;  %s766_s7 = sshll.u32 %s1008_s2, 10  ;;  %s201_s10 = scalar_lea.vmem [#allocation8], %s740_s8 }
  0x5b   : > { %283 = vrot.lane.b32.xlu1 %v274_v38, %s958_s24  ;;  %v297_v27 = vstv %s1207_s13  ;;  %s647_s11 = sshll.u32 %s201_s10, 4  ;;  %s1452_s4 = scalar_lea.hbm %s1509_s3, %s766_s7  ;;  %s1454_s11 = int_to_ptr.vmem [resolvable:$true] %s647_s11 }
  0x5c   : > { %v249_v43 = vsel %vm243_vm1, 0.0, %v244_v41  ;;  %v245_v45 = vrot.slane %v226_v42, 7  ;;  %v1259_v26 = vstv %s1210_s18  ;;  %v306_v32 = vstv %s1217_s29  ;;  %s634_s2 = scalar_lea.sflag [#allocation5], %s1115_s5  ;;  %s882_s8 = scalar_lea.vmem %s1454_s11, 1024 }
  0x5d   : > { %253 = vrot.lane.b32.xlu0 %v249_v43, %s958_s24  ;;  %v300_v28 = vstv %s1212_s20  ;;  %v386_v37 = vstv %s1222_s9  ;;  %p883_p1 = scmp.ne.s32.totalorder %s1454_s11, %s882_s8  ;;  %p1523_p7 = scmp.ne.s32.totalorder %s1515_s25, 0 }
  0x5e   : > { %v246_v46 = vsel %vm243_vm1, %v244_v41, %v245_v45  ;;  %v250_v47 = vsel %vm243_vm1, %v245_v45, 0.0  ;;  %v1286_v45 = vstv %s1235_s27  ;;  %s961_s13 = smov [#allocation8]  }
  0x5f   : > { %285 = vrot.lane.b32.xlu1 %v278_v44, %s958_s24  ;;  %p884_p2 = pnand %p883_p1, %p1523_p7  ;;  %s886_s18 = sshll.u32 %s961_s13, 4  ;;  %s887_s18 = int_to_ptr.vmem [resolvable:$false] %s886_s18 }
  0x60   : > { %s888_s20 = scalar_lea.vmem %s887_s18, 2048  ;;  %p889_p6 = scmp.lt.s32.totalorder %s1454_s11, %s887_s18 }
  0x61   : > { %255 = vrot.lane.b32.xlu0 %v246_v46, %s958_s24  ;;  %p885_p3 = pneg %p884_p2  ;;  %p890_p4 = scmp.lt.s32.totalorder %s888_s20, %s882_s8 }
  0x63   : > { %p891_p5 = por %p890_p4, %p889_p6 }
  0x65   : > { %257 = vrot.lane.b32.xlu0 %v250_v47, %s958_s24  ;;  %s1233_s24 = sld [smem:[#allocation7 + $0x3]]  ;;  %p892_p0 = pnand %p891_p5, %p885_p3 }
  0x6b   : > { %v368_v44 = vstv %s1233_s24 }
  0xc9   : > { %v282_v48 = vpop.permute.xlu1 %281 }
  0xca   : > { %v290_v50 = vsel %vm262_vm2, 0.0, %v282_v48 }
  0xcb   : > { %v1200_v51 = vsel %vm266_vm3, %v290_v50, 0.0 }
  0xcc   : > { %v327_v53 = vmul.f32 %v326_v49, %v1200_v51  ;;  %v425_v57 = vmul.f32 %v424_v52, %v1200_v51  ;;  %v355_v61 = vmul.f32 %v354_v55, %v1200_v51  ;;  %v467_v35 = vmul.f32 %v466_v6, %v1200_v51 }
  0xcd   : > { %v284_v54 = vpop.permute.xlu1 %283  ;;  %v1293_v48 = vmul.f32 %v1231_v9, %v1200_v51 }
  0xce   : > { %v291_v56 = vsel %vm262_vm2, 0.0, %v284_v54  ;;  %331 = vrot.lane.b32.xlu0 %v327_v53, %s959_s21  ;;  %v431_v14 = vrot.slane %v425_v57, 1  ;;  %v487_v54 = vstv %s1249_s23 }
  0xcf   : > { %v1220_v58 = vsel %vm266_vm3, %v291_v56, 0.0  ;;  %v254_v59 = vpop.permute.xlu0 %253 }
  0xd0   : > { %v328_v60 = vmul.f32 %v326_v49, %v1220_v58  ;;  %v426_v62 = vmul.f32 %v424_v52, %v1220_v58  ;;  %v263_v10 = vsel %vm262_vm2, 0.0, %v254_v59  ;;  %v356_v22 = vmul.f32 %v354_v55, %v1220_v58 }
  0xd1   : > { %v286_v63 = vpop.permute.xlu1 %285  ;;  %v1256_v25 = vsel %vm266_vm3, %v263_v10, 0.0  ;;  %v468_v31 = vmul.f32 %v466_v6, %v1220_v58  ;;  %v387_v49 = vmul.f32 %v386_v37, %v1200_v51  ;;  %v1301_v53 = vmul.f32 %v1231_v9, %v1220_v58 }
  0xd2   : > { %v292_v13 = vsel %vm262_vm2, 0.0, %v286_v63  ;;  %333 = vrot.lane.b32.xlu1 %v328_v60, %s959_s21  ;;  %359 = vrot.lane.b32.xlu0 %v355_v61, %s960_s30  ;;  %v432_v15 = vrot.slane %v426_v62, 1  ;;  %v313_v30 = vmul.f32 %v312_v4, %v1256_v25  ;;  %v404_v36 = vmul.f32 %v403_v18, %v1256_v25 }
  0xd3   : > { %v1242_v16 = vsel %vm266_vm3, %v292_v13, 0.0  ;;  %v256_v17 = vpop.permute.xlu0 %255  ;;  %v446_v42 = vmul.f32 %v445_v19, %v1256_v25  ;;  %v474_v47 = vrot.slane %v468_v31, 1  ;;  %v341_v55 = vmul.f32 %v340_v5, %v1256_v25 }
  0xd4   : > { %v264_v21 = vsel %vm262_vm2, 0.0, %v256_v17  ;;  %v433_v23 = vsel %vm375_vm4, %v431_v14, %v432_v15  ;;  %v427_v24 = vmul.f32 %v424_v52, %v1242_v16  ;;  %v469_v41 = vmul.f32 %v466_v6, %v1242_v16 }
  0xd5   : > { %v1269_v33 = vsel %vm266_vm3, %v264_v21, 0.0  ;;  %v473_v52 = vrot.slane %v467_v35, 1  ;;  %v410_v56 = vrot.slane %v404_v36, 1  ;;  %v452_v60 = vrot.slane %v446_v42, 1 }
  0xd6   : > { %361 = vrot.lane.b32.xlu1 %v356_v22, %s960_s30  ;;  %436 = vrot.lane.b32.xlu0 %v433_v23, %s959_s21  ;;  %v434_v29 = vrot.slane %v427_v24, 1  ;;  %v1277_v40 = vmul.f32 %v403_v18, %v1269_v33  ;;  %v1282_v43 = vmul.f32 %v445_v19, %v1269_v33  ;;  %v314_v46 = vmul.f32 %v312_v4, %v1269_v33 }
  0xd7   : > { %v258_v34 = vpop.permute.xlu0 %257  ;;  %v476_v59 = vrot.slane %v469_v41, 1  ;;  %v307_v62 = vmul.f32 %v306_v32, %v1200_v51  ;;  %v506_v63 = vmul.f32 %v1286_v45, %v1200_v51  ;;  %v475_v4 = vsel %vm375_vm4, %v473_v52, %v474_v47 }
  0xd8   : > { %v265_v38 = vsel %vm262_vm2, 0.0, %v258_v34  ;;  %v435_v39 = vsel %vm375_vm4, %v432_v15, %v434_v29  ;;  %v411_v57 = vrot.slane %v1277_v40, 1  ;;  %v453_v61 = vrot.slane %v1282_v43, 1 }
  0xd9   : > { %v1297_v50 = vsel %vm266_vm3, %v265_v38, 0.0  ;;  %v550_v10 = vrot.slane %v1293_v48, 2  ;;  %v393_v13 = vrot.slane %v387_v49, 1  ;;  %v342_v14 = vmul.f32 %v340_v5, %v1269_v33 }
  0xda   : > { %438 = vrot.lane.b32.xlu1 %v435_v39, %s959_s21  ;;  %317 = vrot.lane.b32.xlu0 %v313_v30, %s959_s21  ;;  %v406_v6 = vmul.f32 %v403_v18, %v1297_v50  ;;  %v551_v15 = vrot.slane %v1301_v53, 2  ;;  %v448_v17 = vmul.f32 %v445_v19, %v1297_v50  ;;  %v1324_v21 = vmul.f32 %v1247_v20, %v1256_v25 }
  0xdb   : > { %v412_v22 = vsel %vm375_vm4, %v410_v56, %v411_v57  ;;  %v477_v18 = vsel %vm375_vm4, %v474_v47, %v476_v59  ;;  %v1330_v23 = vmul.f32 %v1247_v20, %v1269_v33  ;;  %v301_v5 = vmul.f32 %v300_v28, %v1256_v25 }
  0xdc   : > { %v454_v24 = vsel %vm375_vm4, %v452_v60, %v453_v61  ;;  %v546_v19 = vmul.f32 %v1231_v9, %v1242_v16  ;;  %v302_v29 = vmul.f32 %v300_v28, %v1269_v33  ;;  %v369_v30 = vmul.f32 %v368_v44, %v1256_v25 }
  0xdd   : > { %v413_v31 = vrot.slane %v406_v6, 1  ;;  %v303_v34 = vadd.f32 %v301_v5, %v297_v27  ;;  %v370_v35 = vmul.f32 %v368_v44, %v1269_v33  ;;  %v388_v36 = vmul.f32 %v386_v37, %v1220_v58 }
  0xde   : > { %345 = vrot.lane.b32.xlu0 %v341_v55, %s960_s30  ;;  %319 = vrot.lane.b32.xlu1 %v314_v46, %s959_s21  ;;  %v455_v38 = vrot.slane %v448_v17, 1  ;;  %v308_v39 = vmul.f32 %v306_v32, %v1220_v58  ;;  %v304_v9 = vadd.f32 %v302_v29, %v297_v27  ;;  %v376_v40 = vrot.slane %v369_v30, 1 }
  0xdf   : > { %v1349_v28 = vadd.f32 %v307_v62, %v303_v34  ;;  %v377_v41 = vrot.slane %v370_v35, 1  ;;  %v394_v42 = vrot.slane %v388_v36, 1  ;;  %v389_v46 = vmul.f32 %v386_v37, %v1242_v16 }
  0xe0   : > { %v1352_v47 = vadd.f32 %v308_v39, %v304_v9  ;;  %v371_v48 = vmul.f32 %v368_v44, %v1297_v50  ;;  %v488_v49 = vmul.f32 %v487_v54, %v1256_v25  ;;  %v489_v52 = vmul.f32 %v487_v54, %v1269_v33 }
  0xe1   : > { %v1360_v27 = vsel %vm375_vm4, %v376_v40, %v377_v41  ;;  %v1363_v32 = vsel %vm375_vm4, %v393_v13, %v394_v42  ;;  %v396_v55 = vrot.slane %v389_v46, 1  ;;  %v507_v37 = vmul.f32 %v1286_v45, %v1220_v58 }
  0xe2   : > { %478 = vrot.lane.b32.xlu0 %v475_v4, %s960_s30  ;;  %347 = vrot.lane.b32.xlu1 %v342_v14, %s960_s30  ;;  %v379_v44 = vrot.slane %v371_v48, 1  ;;  %v495_v56 = vrot.slane %v488_v49, 2  ;;  %v496_v59 = vrot.slane %v489_v52, 2  ;;  %v490_v60 = vmul.f32 %v487_v54, %v1297_v50 }
  0xe3   : > { %v1369_v62 = vsel %vm375_vm4, %v394_v42, %v396_v55  ;;  %v512_v4 = vrot.slane %v506_v63, 2  ;;  %v513_v6 = vrot.slane %v507_v37, 2  ;;  %v508_v14 = vmul.f32 %v1286_v45, %v1242_v16 }
  0xe4   : > { %v414_v13 = vsel %vm375_vm4, %v411_v57, %v413_v31  ;;  %v1375_v17 = vsel %vm375_vm4, %v377_v41, %v379_v44  ;;  %v552_v45 = vsel %vm494_vm5, %v550_v10, %v551_v15  ;;  %v529_v5 = vrot.slane %v1324_v21, 2 }
  0xe5   : > { %v1383_v54 = vsel %vm494_vm5, %v512_v4, %v513_v6  ;;  %v515_v63 = vrot.slane %v508_v14, 2  ;;  %v530_v29 = vrot.slane %v1330_v23, 2  ;;  %v456_v31 = vsel %vm375_vm4, %v453_v61, %v455_v38 }
  0xe6   : > { %415 = vrot.lane.b32.xlu0 %v412_v22, %s959_s21  ;;  %480 = vrot.lane.b32.xlu1 %v477_v18, %s960_s30  ;;  %v1378_v22 = vsel %vm494_vm5, %v495_v56, %v496_v59  ;;  %v498_v18 = vrot.slane %v490_v60, 2  ;;  %v553_v34 = vrot.slane %v546_v19, 2  ;;  %v566_v10 = vmul.f32 %v1259_v26, %v1269_v33 }
  0xe7   : > { %v1396_v30 = vsel %vm494_vm5, %v513_v6, %v515_v63  ;;  %v525_v35 = vmul.f32 %v1247_v20, %v1297_v50  ;;  %v585_v21 = vstv %s759_s6  ;;  %v567_v33 = vmul.f32 %v1259_v26, %v1297_v50 }
  0xe8   : > { %v1389_v57 = vsel %vm494_vm5, %v496_v59, %v498_v18  ;;  %v587_v36 = vmul.f32 %v585_v21, %v1220_v58  ;;  %v554_v43 = vsel %vm494_vm5, %v551_v15, %v553_v34  ;;  %v572_v61 = vrot.slane %v566_v10, 2 }
  0xe9   : > { %v532_v19 = vrot.slane %v525_v35, 2  ;;  %v586_v20 = vmul.f32 %v585_v21, %v1200_v51  ;;  %v574_v9 = vrot.slane %v567_v33, 2  ;;  %v588_v53 = vmul.f32 %v585_v21, %v1242_v16 }
  0xea   : > { %457 = vrot.lane.b32.xlu0 %v454_v24, %s960_s30  ;;  %417 = vrot.lane.b32.xlu1 %v414_v13, %s959_s21  ;;  %v565_v24 = vmul.f32 %v1259_v26, %v1256_v25  ;;  %v531_v25 = vsel %vm494_vm5, %v529_v5, %v530_v29  ;;  %v593_v38 = vrot.slane %v587_v36, 2 }
  0xeb   : > { %v533_v58 = vsel %vm494_vm5, %v530_v29, %v532_v19  ;;  %v592_v15 = vrot.slane %v586_v20, 2  ;;  %v575_v50 = vsel %vm494_vm5, %v572_v61, %v574_v9  ;;  %v595_v40 = vrot.slane %v588_v53, 2 }
  0xec   : > { %v571_v23 = vrot.slane %v565_v24, 2 }
  0xed   : > { %v594_v26 = vsel %vm494_vm5, %v592_v15, %v593_v38  ;;  %v596_v51 = vsel %vm494_vm5, %v593_v38, %v595_v40 }
  0xee   : > { %555 = vrot.lane.b32.xlu0 %v552_v45, %s959_s21  ;;  %459 = vrot.lane.b32.xlu1 %v456_v31, %s960_s30  ;;  %v573_v39 = vsel %vm494_vm5, %v571_v23, %v572_v61 }
  0xf2   : > { %534 = vrot.lane.b32.xlu0 %v531_v25, %s959_s21  ;;  %557 = vrot.lane.b32.xlu1 %v554_v43, %s959_s21 }
  0xf6   : > { %576 = vrot.lane.b32.xlu0 %v573_v39, %s960_s30  ;;  %536 = vrot.lane.b32.xlu1 %v533_v58, %s959_s21 }
  0xfa   : > { %597 = vrot.lane.b32.xlu0 %v594_v26, %s960_s30  ;;  %578 = vrot.lane.b32.xlu1 %v575_v50, %s960_s30 }
  0xfe   : > { %599 = vrot.lane.b32.xlu1 %v596_v51, %s960_s30 }
 0x140   : > { %v332_v41 = vpop.permute.xlu0 %331 }
 0x144   : > { %v334_v16 = vpop.permute.xlu1 %333  ;;  %v360_v42 = vpop.permute.xlu0 %359 }
 0x148   : > { %v362_v46 = vpop.permute.xlu1 %361  ;;  %v437_v48 = vpop.permute.xlu0 %436 }
 0x14c   : > { %v439_v49 = vpop.permute.xlu1 %438  ;;  %v318_v52 = vpop.permute.xlu0 %317 }
 0x14d   : > { %v323_v55 = vadd.f32 %v318_v52, %v1349_v28 }
 0x14f   : > { %v337_v37 = vadd.f32 %v332_v41, %v323_v55 }
 0x150   : > { %v320_v44 = vpop.permute.xlu1 %319  ;;  %v346_v56 = vpop.permute.xlu0 %345 }
 0x151   : > { %v324_v59 = vadd.f32 %v320_v44, %v1352_v47  ;;  %v351_v60 = vadd.f32 %v346_v56, %v337_v37 }
 0x153   : > { %v365_v4 = vadd.f32 %v360_v42, %v351_v60  ;;  %v338_v6 = vadd.f32 %v334_v16, %v324_v59 }
 0x154   : > { %v348_v14 = vpop.permute.xlu1 %347  ;;  %v479_v13 = vpop.permute.xlu0 %478 }
 0x155   : > { %v352_v18 = vadd.f32 %v348_v14, %v338_v6  ;;  %v383_v63 = vadd.f32 %v1360_v27, %v365_v4 }
 0x157   : > { %v366_v45 = vadd.f32 %v362_v46, %v352_v18  ;;  %v400_v5 = vadd.f32 %v1363_v32, %v383_v63 }
 0x158   : > { %v481_v29 = vpop.permute.xlu1 %480  ;;  %v416_v24 = vpop.permute.xlu0 %415 }
 0x159   : > { %v421_v31 = vadd.f32 %v416_v24, %v400_v5  ;;  %v384_v28 = vadd.f32 %v1375_v17, %v366_v45 }
 0x15b   : > { %v401_v34 = vadd.f32 %v1369_v62, %v384_v28  ;;  %v442_v10 = vadd.f32 %v437_v48, %v421_v31 }
 0x15c   : > { %v418_v47 = vpop.permute.xlu1 %417  ;;  %v458_v35 = vpop.permute.xlu0 %457 }
 0x15d   : > { %v422_v21 = vadd.f32 %v418_v47, %v401_v34  ;;  %v463_v25 = vadd.f32 %v458_v35, %v442_v10 }
 0x15f   : > { %v484_v23 = vadd.f32 %v479_v13, %v463_v25  ;;  %v443_v36 = vadd.f32 %v439_v49, %v422_v21 }
 0x160   : > { %v460_v43 = vpop.permute.xlu1 %459  ;;  %v556_v61 = vpop.permute.xlu0 %555 }
 0x161   : > { %v464_v27 = vadd.f32 %v460_v43, %v443_v36  ;;  %v502_v19 = vadd.f32 %v1378_v22, %v484_v23 }
 0x163   : > { %v485_v32 = vadd.f32 %v481_v29, %v464_v27  ;;  %v519_v33 = vadd.f32 %v1383_v54, %v502_v19 }
 0x164   : > { %v558_v20 = vpop.permute.xlu1 %557  ;;  %v535_v38 = vpop.permute.xlu0 %534 }
 0x165   : > { %v540_v17 = vadd.f32 %v535_v38, %v519_v33  ;;  %v503_v62 = vadd.f32 %v1389_v57, %v485_v32 }
 0x167   : > { %v520_v39 = vadd.f32 %v1396_v30, %v503_v62  ;;  %v561_v58 = vadd.f32 %v556_v61, %v540_v17 }
 0x168   : > { %v537_v9 = vpop.permute.xlu1 %536  ;;  %v577_v53 = vpop.permute.xlu0 %576 }
 0x169   : > { %v541_v15 = vadd.f32 %v537_v9, %v520_v39  ;;  %v582_v26 = vadd.f32 %v577_v53, %v561_v58 }
 0x16b   : > { %v562_v50 = vadd.f32 %v558_v20, %v541_v15 }
 0x16c   : > { %v579_v40 = vpop.permute.xlu1 %578  ;;  %v598_v51 = vpop.permute.xlu0 %597 }
 0x16d   : > { %v603_v41 = vadd.f32 %v598_v51, %v582_v26  ;;  %v583_v22 = vadd.f32 %v579_v40, %v562_v50 }
 0x16f   : > { %v605_v16 = vsub.f32 0.0, %v603_v41 }
 0x170   : > { %v600_v42 = vpop.permute.xlu1 %599 }
 0x171   : > { %v607_v54 = vmul.f32 1.442695, %v605_v16  ;;  %v604_v46 = vadd.f32 %v600_v42, %v583_v22 }
 0x173   : > { %831 = vpow2.f32 %v607_v54  ;;  %v606_v57 = vsub.f32 0.0, %v604_v46 }
 0x175   : > { %v609_v48 = vmul.f32 1.442695, %v606_v57 }
 0x177   : > { %833 = vpow2.f32 %v609_v48 }
 0x17d   : > { %v832_v30 = vpop.eup %831 }
 0x17e   : > { %v611_v49 = vadd.f32 1.0, %v832_v30 }
 0x180   : > { %835 = vrcp.f32 %v611_v49 }
 0x181   : > { %v834_v52 = vpop.eup %833 }
 0x182   : > { %v612_v55 = vadd.f32 1.0, %v834_v52 }
 0x184   : > { %837 = vrcp.f32 %v612_v55 }
 0x18a   : > { %v836_v37 = vpop.eup %835 }
 0x18b   : > { %v617_v44 = vmul.f32 %v836_v37, %v1129_v0  ;;  %v619_v56 = vmul.f32 %v836_v37, %v1131_v1  ;;  %v621_v59 = vmul.f32 %v836_v37, %v1133_v2  ;;  %v623_v60 = vmul.f32 %v836_v37, %v1135_v3 }
 0x18d   : > { %625 = vst.msk [vmem:[%s201_s10] sm:$0xff] %vm210_vm0, %v617_v44  ;;  %627 = vst.msk [vmem:[%s201_s10 + $0x10] sm:$0xff] %vm210_vm0, %v619_v56 }
 0x18e   : > { %629 = vst.msk [vmem:[%s201_s10 + $0x20] sm:$0xff] %vm210_vm0, %v621_v59  ;;  %631 = vst.msk [vmem:[%s201_s10 + $0x30] sm:$0xff] %vm210_vm0, %v623_v60  ;;  %v838_v0 = vpop.eup %837 }
 0x18f   : > { %v618_v1 = vmul.f32 %v838_v0, %v1143_v7  ;;  %v620_v2 = vmul.f32 %v838_v0, %v1145_v8  ;;  %v622_v3 = vmul.f32 %v838_v0, %v1149_v11  ;;  %v624_v4 = vmul.f32 %v838_v0, %v1151_v12 }
 0x191   : > { %626 = vst.msk [vmem:[%s201_s10 + $0x8] sm:$0xff] %vm210_vm0, %v618_v1  ;;  %628 = vst.msk [vmem:[%s201_s10 + $0x18] sm:$0xff] %vm210_vm0, %v620_v2 }
 0x192   : > { %630 = vst.msk [vmem:[%s201_s10 + $0x28] sm:$0xff] %vm210_vm0, %v622_v3  ;;  %632 = vst.msk [vmem:[%s201_s10 + $0x38] sm:$0xff] %vm210_vm0, %v624_v4 }
 0x193   : > { %895 = shalt.err (!%p892_p0)
}
 0x194   : > { %s896_s21 = scalar_lea.hbm %s1452_s4, 1024  ;;  %s900_s24 = scalar_lea.hbm %s1509_s3, 2048 }
 0x195   : > { %p897_p8 = scmp.ne.s32.totalorder %s1452_s4, %s896_s21  ;;  %p901_p11 = scmp.lt.u32.totalorder %s1452_s4, %s1509_s3 }
 0x196   : > { %p902_p12 = scmp.lt.u32.totalorder %s900_s24, %s896_s21  ;;  %p904_p1 = scmp.lt.u32.totalorder %s896_s21, %s1452_s4 }
 0x197   : > { %p898_p9 = pnand %p897_p8, %p1523_p7 }
 0x198   : > { %p903_p13 = por %p902_p12, %p901_p11 }
 0x199   : > { %p899_p10 = pneg %p898_p9 }
 0x19a   : > { %p905_p2 = por %p904_p1, %p903_p13 }
 0x19c   : > { %p906_p3 = pnand %p905_p2, %p899_p10 }
 0x19e   : > { %909 = shalt.err (!%p906_p3)
}
 0x19f   : > { %s962_s23 = smov 128   ;;  %s963_s6 = smov 8  }
 0x1a0   : > { %773 = dma.vmem_to_hbm [thread:$0]  (%p1523_p7), %s1454_s11, 1024, %s1452_s4, %s634_s2, %s962_s23, %s962_s23, %s963_s6  }
 0x1a1 PF: > { %s662_s7 = sand.u32 1, %s940_s14   ;;  %p1524_p6 = scmp.ne.s32.totalorder %s1516_s26, 0 }
 0x1a2   : > { %p1525_p4 = scmp.ge.s32.totalorder %s952_s17, 2  ;;  %s663_s10 = scalar_lea.sflag [#allocation5], %s662_s7 }
 0x1a4   : > { %p784_p5 = pnand %p1525_p4, %p1524_p6 }
 0x1a6   : > { %935 = dma.done.wait (!%p784_p5), %s663_s10, 1024  }
 0x1a7   : > { %937 = vsyncadd (!%p784_p5), %s663_s10, 4294966272  ;;  %p18_p0 = scmp.ge.s32.totalorder %s1012_s19, 4   ;;  %s1526_s14 = smov %s944_s15 }
 0x1a8   : > { %s1527_s15 = smov %s948_s16  ;;  %s1528_s16 = smov %s1024_s22 }
 0x1a9   : > { %s1529_s17 = smov %s1012_s19  ;;  %20 = sbr.rel (!%p18_p0) target bundleno = 8 (0x8), region = 82 }
 0x1b0   :  { %668 = vsyncpa [#allocation4], 1 }
 0x1b1   :  { %670 = vsyncpa [#allocation4 + $0x1], 1 }
 0x1b2   :  { %671 = vsyncpa [#allocation5], 1 }
 0x1b3   :  { %673 = vsyncpa [#allocation5 + $0x1], 1 }
 0x1b4   :  { %674 = vsyncpa [#allocation6], 1 }
 0x1b5   :  { %676 = vsyncpa [#allocation6 + $0x1], 1 }

</bundles_post_ra>
